<compile_context>
chip_gen: v5e
topology: v5e:2x2
jax: 0.10.0
libtpu: 0.0.40
codegen_flags: <defaults>
</compile_context>

<pallas_src>
import functools

import jax
import jax.numpy as jnp
from jax.experimental import pallas as pl
from jax.experimental.pallas import tpu as pltpu


def _sparsemax_kernel(x_ref, o_ref, *, chunk):
    # x_ref / o_ref: (D, T) VMEM tiles; T (original rows) is the lane axis.
    d, t = x_ref.shape
    n_chunks = t // chunk

    for ci in range(n_chunks):
        c0 = ci * chunk                                         # static offset
        x = x_ref[:, pl.ds(c0, chunk)].astype(jnp.float32)      # (D, Tc)
        # numerical stabilization (matches the reference: subtract per-row max)
        x = x - jnp.max(x, axis=0, keepdims=True)

        # Fused pairwise rank / sum:
        #   k_i = #{j : x_j >= x_i},  s_i = sum_{j : x_j >= x_i} x_j
        # One compare per j, reused for both accumulators; accumulators stay
        # vreg-resident (float32 on purpose -- exact for D < 2^24).
        k = jnp.zeros((d, chunk), jnp.float32)
        s = jnp.zeros((d, chunk), jnp.float32)
        for j in range(d):                                      # unrolled, static slices
            xj = x[j:j + 1, :]                                  # (1, Tc) sublane bcast
            ge = xj >= x                                        # (D, Tc) bool
            k = k + jnp.where(ge, 1.0, 0.0)
            s = s + jnp.where(ge, xj, 0.0)

        # support condition: 1 + k * z > S  (shift invariant, tie safe)
        cond = (1.0 + k * x) > s
        k_star = jnp.max(jnp.where(cond, k, 0.0), axis=0, keepdims=True)
        k_star = jnp.maximum(k_star, 1.0)                       # clamp(min=1)

        in_support = k <= k_star
        s_star = jnp.sum(jnp.where(in_support, x, 0.0), axis=0, keepdims=True)
        # exact division (review: approx reciprocal can flip boundary outputs)
        tau = (s_star - 1.0) / k_star

        o_ref[:, pl.ds(c0, chunk)] = jnp.maximum(x - tau, 0.0).astype(o_ref.dtype)


def _round_up(v, m):
    return ((v + m - 1) // m) * m


def _pick_tiling(d, r):
    """Returns (tile_cols, chunk): lane tile per grid step, in-kernel chunk.

    chunk keeps x + k + s (3 * d * chunk * 4 B) vreg-resident; tile_cols is a
    balanced multiple of 128 that amortizes per-grid-step overhead, keeps the
    double-buffered in/out blocks small (v7x-safe), and yields >= 2 grid steps
    whenever possible (v7x megacore).
    """
    d = max(d, 1)
    if r <= 128:
        return r, r                      # single full-extent block

    r128 = _round_up(r, 128)

    # vreg-residency cap for the in-kernel chunk (~96 KiB of the 256 KiB file)
    chunk_max = max(128, min(512, ((96 * 1024) // (12 * d)) // 128 * 128))

    # grid-tile cap: 4 double-buffered (d, tile) f32 blocks <= ~8 MiB
    vmem_tile = ((8 * 1024 * 1024) // (16 * d)) // 128 * 128
    t_max = max(128, min(2048, vmem_tile))

    n_steps = -(-r128 // t_max)
    if r128 >= 256:
        n_steps = max(n_steps, 2)        # >= 2 steps: shard across v7x TCs
    tile = _round_up(-(-r128 // n_steps), 128)

    # largest multiple-of-128 divisor of the tile within the vreg budget
    chunk = 128
    for m in range(1, tile // 128 + 1):
        c = 128 * m
        if tile % c == 0 and c <= chunk_max:
            chunk = c
    return tile, chunk


def sparsemax(x, dim=-1):
    """Pallas-backed sparsemax along `dim`. Same semantics as the PyTorch
    SparsemaxFunction.forward."""
    ndim = x.ndim
    dim = dim if dim >= 0 else ndim + dim
    xt = jnp.swapaxes(x, dim, -1)
    t_shape = xt.shape
    d = t_shape[-1]
    flat = xt.reshape(-1, d)                       # (R, D)
    r = flat.shape[0]

    tile_cols, chunk = _pick_tiling(d, r)
    grid = pl.cdiv(r, tile_cols)
    rp = grid * tile_cols
    pad = rp - r

    # lane-dense layout: rows -> lanes.
    # TODO(synk): fuse this transpose (and the output one) into the kernel.
    xT = flat.T                                    # (D, R)
    if pad:                                        # only on ragged row counts
        xT = jnp.pad(xT, ((0, 0), (0, pad)))

    itemsize = jnp.dtype(flat.dtype).itemsize
    cost = pl.CostEstimate(
        flops=int(5 * r * d * d + 10 * r * d),
        transcendentals=0,
        bytes_accessed=int(2 * r * d * itemsize),
    )

    kernel = functools.partial(_sparsemax_kernel, chunk=chunk)
    out_t = pl.pallas_call(
        kernel,
        out_shape=jax.ShapeDtypeStruct((d, rp), flat.dtype),
        grid=(grid,),
        in_specs=[pl.BlockSpec((d, tile_cols), lambda i: (0, i))],
        out_specs=pl.BlockSpec((d, tile_cols), lambda i: (0, i)),
        compiler_params=pltpu.CompilerParams(
            dimension_semantics=("parallel",),
            vmem_limit_bytes=32 * 1024 * 1024,     # safe on v7x (64 MiB physical)
        ),
        cost_estimate=cost,
    )(xT)

    out = out_t[:, :r].T.reshape(t_shape)
    return jnp.swapaxes(out, dim, -1)


def _sparsemax_reference(x, dim=-1):
    """Pure-JAX sort-based reference (mirrors the PyTorch code) for validation."""
    ndim = x.ndim
    dim = dim if dim >= 0 else ndim + dim
    xt = jnp.swapaxes(x, dim, -1)
    shp = xt.shape
    z = xt.reshape(-1, shp[-1])
    z = z - jnp.max(z, axis=1, keepdims=True)
    zs = -jnp.sort(-z, axis=1)                                  # descending
    cs = jnp.cumsum(zs, axis=1)
    rng = jnp.arange(1, zs.shape[1] + 1, dtype=z.dtype)[None, :]
    bound = zs - (cs - 1.0) / rng
    k = jnp.clip(jnp.sum((bound > 0).astype(jnp.int32), axis=1, keepdims=True), 1, None)
    tau = (jnp.take_along_axis(cs, k - 1, axis=1) - 1.0) / k.astype(z.dtype)
    out = jnp.clip(z - tau, 0.0, None)
    return jnp.swapaxes(out.reshape(shp), dim, -1)


if __name__ == "__main__":
    key = jax.random.PRNGKey(0)
    x = jax.random.normal(key, (2, 4, 16, 16), dtype=jnp.float32)  # NCHW

    y = jax.block_until_ready(sparsemax(x, dim=-1))
    y_ref = _sparsemax_reference(x, dim=-1)
    assert y.shape == x.shape and y.dtype == x.dtype
    assert jnp.max(jnp.abs(y - y_ref)) < 1e-5, "mismatch vs reference"
    # sparsemax outputs form a distribution along the reduced axis
    assert jnp.max(jnp.abs(jnp.sum(y, axis=-1) - 1.0)) < 1e-4

    # deliberate ties (review correctness concern: tie handling)
    x_ties = jnp.round(x * 2.0) / 2.0
    y_t = jax.block_until_ready(sparsemax(x_ties, dim=-1))
    assert jnp.max(jnp.abs(y_t - _sparsemax_reference(x_ties, dim=-1))) < 1e-5

    # non-last reduction dim + small row count (full-extent block path)
    x2 = jax.random.normal(jax.random.PRNGKey(1), (3, 16, 10), dtype=jnp.float32)
    y2 = jax.block_until_ready(sparsemax(x2, dim=1))
    assert jnp.max(jnp.abs(y2 - _sparsemax_reference(x2, dim=1))) < 1e-5

    print("KERNEL_OK")
</pallas_src>

<mosaic_0001>
module attributes {stable_mosaic.version = 11 : i64} {
  func.func @_sparsemax_kernel(%arg0: i32, %arg1: memref<16x128xf32, #tpu.memory_space<vmem>>, %arg2: memref<16x128xf32, #tpu.memory_space<vmem>>) attributes {dimension_semantics = [#tpu.dimension_semantics<parallel>], iteration_bounds = array<i64: 1>, scalar_prefetch = 0 : i64, scratch_operands = 0 : i64, tpu.core_type = #tpu.core_type<tc>, window_params = [{transform_indices = @transform_0, window_bounds = array<i64: 16, 128>}, {transform_indices = @transform_1, window_bounds = array<i64: 16, 128>}]} {
    %c0 = arith.constant 0 : index
    %c0_0 = arith.constant 0 : index
    %0 = vector.load %arg1[%c0, %c0_0] : memref<16x128xf32, #tpu.memory_space<vmem>>, vector<16x128xf32>
    %cst = arith.constant dense<0xFF800000> : vector<128xf32>
    %1 = vector.multi_reduction <maximumf>, %0, %cst [0] : vector<16x128xf32> to vector<128xf32>
    %2 = vector.shape_cast %1 : vector<128xf32> to vector<1x128xf32>
    %3 = vector.broadcast %2 : vector<1x128xf32> to vector<16x128xf32>
    %4 = arith.subf %0, %3 : vector<16x128xf32>
    %cst_1 = arith.constant 0.000000e+00 : f32
    %5 = vector.broadcast %cst_1 : f32 to vector<16x128xf32>
    %cst_2 = arith.constant 0.000000e+00 : f32
    %6 = vector.broadcast %cst_2 : f32 to vector<16x128xf32>
    %7 = vector.extract_strided_slice %4 {offsets = [0, 0], sizes = [1, 128], strides = [1, 1]} : vector<16x128xf32> to vector<1x128xf32>
    %8 = vector.broadcast %7 : vector<1x128xf32> to vector<16x128xf32>
    %9 = arith.cmpf oge, %8, %4 : vector<16x128xf32>
    %cst_3 = arith.constant 1.000000e+00 : f32
    %cst_4 = arith.constant 0.000000e+00 : f32
    %10 = vector.broadcast %cst_3 : f32 to vector<16x128xf32>
    %11 = vector.broadcast %cst_4 : f32 to vector<16x128xf32>
    %12 = arith.select %9, %10, %11 : vector<16x128xi1>, vector<16x128xf32>
    %13 = arith.addf %5, %12 : vector<16x128xf32>
    %cst_5 = arith.constant 0.000000e+00 : f32
    %14 = vector.shape_cast %7 : vector<1x128xf32> to vector<1x128xf32>
    %15 = vector.broadcast %14 : vector<1x128xf32> to vector<16x128xf32>
    %16 = vector.broadcast %cst_5 : f32 to vector<16x128xf32>
    %17 = arith.select %9, %15, %16 : vector<16x128xi1>, vector<16x128xf32>
    %18 = arith.addf %6, %17 : vector<16x128xf32>
    %19 = vector.extract_strided_slice %4 {offsets = [1, 0], sizes = [1, 128], strides = [1, 1]} : vector<16x128xf32> to vector<1x128xf32>
    %20 = vector.broadcast %19 : vector<1x128xf32> to vector<16x128xf32>
    %21 = arith.cmpf oge, %20, %4 : vector<16x128xf32>
    %cst_6 = arith.constant 1.000000e+00 : f32
    %cst_7 = arith.constant 0.000000e+00 : f32
    %22 = vector.broadcast %cst_6 : f32 to vector<16x128xf32>
    %23 = vector.broadcast %cst_7 : f32 to vector<16x128xf32>
    %24 = arith.select %21, %22, %23 : vector<16x128xi1>, vector<16x128xf32>
    %25 = arith.addf %13, %24 : vector<16x128xf32>
    %cst_8 = arith.constant 0.000000e+00 : f32
    %26 = vector.shape_cast %19 : vector<1x128xf32> to vector<1x128xf32>
    %27 = vector.broadcast %26 : vector<1x128xf32> to vector<16x128xf32>
    %28 = vector.broadcast %cst_8 : f32 to vector<16x128xf32>
    %29 = arith.select %21, %27, %28 : vector<16x128xi1>, vector<16x128xf32>
    %30 = arith.addf %18, %29 : vector<16x128xf32>
    %31 = vector.extract_strided_slice %4 {offsets = [2, 0], sizes = [1, 128], strides = [1, 1]} : vector<16x128xf32> to vector<1x128xf32>
    %32 = vector.broadcast %31 : vector<1x128xf32> to vector<16x128xf32>
    %33 = arith.cmpf oge, %32, %4 : vector<16x128xf32>
    %cst_9 = arith.constant 1.000000e+00 : f32
    %cst_10 = arith.constant 0.000000e+00 : f32
    %34 = vector.broadcast %cst_9 : f32 to vector<16x128xf32>
    %35 = vector.broadcast %cst_10 : f32 to vector<16x128xf32>
    %36 = arith.select %33, %34, %35 : vector<16x128xi1>, vector<16x128xf32>
    %37 = arith.addf %25, %36 : vector<16x128xf32>
    %cst_11 = arith.constant 0.000000e+00 : f32
    %38 = vector.shape_cast %31 : vector<1x128xf32> to vector<1x128xf32>
    %39 = vector.broadcast %38 : vector<1x128xf32> to vector<16x128xf32>
    %40 = vector.broadcast %cst_11 : f32 to vector<16x128xf32>
    %41 = arith.select %33, %39, %40 : vector<16x128xi1>, vector<16x128xf32>
    %42 = arith.addf %30, %41 : vector<16x128xf32>
    %43 = vector.extract_strided_slice %4 {offsets = [3, 0], sizes = [1, 128], strides = [1, 1]} : vector<16x128xf32> to vector<1x128xf32>
    %44 = vector.broadcast %43 : vector<1x128xf32> to vector<16x128xf32>
    %45 = arith.cmpf oge, %44, %4 : vector<16x128xf32>
    %cst_12 = arith.constant 1.000000e+00 : f32
    %cst_13 = arith.constant 0.000000e+00 : f32
    %46 = vector.broadcast %cst_12 : f32 to vector<16x128xf32>
    %47 = vector.broadcast %cst_13 : f32 to vector<16x128xf32>
    %48 = arith.select %45, %46, %47 : vector<16x128xi1>, vector<16x128xf32>
    %49 = arith.addf %37, %48 : vector<16x128xf32>
    %cst_14 = arith.constant 0.000000e+00 : f32
    %50 = vector.shape_cast %43 : vector<1x128xf32> to vector<1x128xf32>
    %51 = vector.broadcast %50 : vector<1x128xf32> to vector<16x128xf32>
    %52 = vector.broadcast %cst_14 : f32 to vector<16x128xf32>
    %53 = arith.select %45, %51, %52 : vector<16x128xi1>, vector<16x128xf32>
    %54 = arith.addf %42, %53 : vector<16x128xf32>
    %55 = vector.extract_strided_slice %4 {offsets = [4, 0], sizes = [1, 128], strides = [1, 1]} : vector<16x128xf32> to vector<1x128xf32>
    %56 = vector.broadcast %55 : vector<1x128xf32> to vector<16x128xf32>
    %57 = arith.cmpf oge, %56, %4 : vector<16x128xf32>
    %cst_15 = arith.constant 1.000000e+00 : f32
    %cst_16 = arith.constant 0.000000e+00 : f32
    %58 = vector.broadcast %cst_15 : f32 to vector<16x128xf32>
    %59 = vector.broadcast %cst_16 : f32 to vector<16x128xf32>
    %60 = arith.select %57, %58, %59 : vector<16x128xi1>, vector<16x128xf32>
    %61 = arith.addf %49, %60 : vector<16x128xf32>
    %cst_17 = arith.constant 0.000000e+00 : f32
    %62 = vector.shape_cast %55 : vector<1x128xf32> to vector<1x128xf32>
    %63 = vector.broadcast %62 : vector<1x128xf32> to vector<16x128xf32>
    %64 = vector.broadcast %cst_17 : f32 to vector<16x128xf32>
    %65 = arith.select %57, %63, %64 : vector<16x128xi1>, vector<16x128xf32>
    %66 = arith.addf %54, %65 : vector<16x128xf32>
    %67 = vector.extract_strided_slice %4 {offsets = [5, 0], sizes = [1, 128], strides = [1, 1]} : vector<16x128xf32> to vector<1x128xf32>
    %68 = vector.broadcast %67 : vector<1x128xf32> to vector<16x128xf32>
    %69 = arith.cmpf oge, %68, %4 : vector<16x128xf32>
    %cst_18 = arith.constant 1.000000e+00 : f32
    %cst_19 = arith.constant 0.000000e+00 : f32
    %70 = vector.broadcast %cst_18 : f32 to vector<16x128xf32>
    %71 = vector.broadcast %cst_19 : f32 to vector<16x128xf32>
    %72 = arith.select %69, %70, %71 : vector<16x128xi1>, vector<16x128xf32>
    %73 = arith.addf %61, %72 : vector<16x128xf32>
    %cst_20 = arith.constant 0.000000e+00 : f32
    %74 = vector.shape_cast %67 : vector<1x128xf32> to vector<1x128xf32>
    %75 = vector.broadcast %74 : vector<1x128xf32> to vector<16x128xf32>
    %76 = vector.broadcast %cst_20 : f32 to vector<16x128xf32>
    %77 = arith.select %69, %75, %76 : vector<16x128xi1>, vector<16x128xf32>
    %78 = arith.addf %66, %77 : vector<16x128xf32>
    %79 = vector.extract_strided_slice %4 {offsets = [6, 0], sizes = [1, 128], strides = [1, 1]} : vector<16x128xf32> to vector<1x128xf32>
    %80 = vector.broadcast %79 : vector<1x128xf32> to vector<16x128xf32>
    %81 = arith.cmpf oge, %80, %4 : vector<16x128xf32>
    %cst_21 = arith.constant 1.000000e+00 : f32
    %cst_22 = arith.constant 0.000000e+00 : f32
    %82 = vector.broadcast %cst_21 : f32 to vector<16x128xf32>
    %83 = vector.broadcast %cst_22 : f32 to vector<16x128xf32>
    %84 = arith.select %81, %82, %83 : vector<16x128xi1>, vector<16x128xf32>
    %85 = arith.addf %73, %84 : vector<16x128xf32>
    %cst_23 = arith.constant 0.000000e+00 : f32
    %86 = vector.shape_cast %79 : vector<1x128xf32> to vector<1x128xf32>
    %87 = vector.broadcast %86 : vector<1x128xf32> to vector<16x128xf32>
    %88 = vector.broadcast %cst_23 : f32 to vector<16x128xf32>
    %89 = arith.select %81, %87, %88 : vector<16x128xi1>, vector<16x128xf32>
    %90 = arith.addf %78, %89 : vector<16x128xf32>
    %91 = vector.extract_strided_slice %4 {offsets = [7, 0], sizes = [1, 128], strides = [1, 1]} : vector<16x128xf32> to vector<1x128xf32>
    %92 = vector.broadcast %91 : vector<1x128xf32> to vector<16x128xf32>
    %93 = arith.cmpf oge, %92, %4 : vector<16x128xf32>
    %cst_24 = arith.constant 1.000000e+00 : f32
    %cst_25 = arith.constant 0.000000e+00 : f32
    %94 = vector.broadcast %cst_24 : f32 to vector<16x128xf32>
    %95 = vector.broadcast %cst_25 : f32 to vector<16x128xf32>
    %96 = arith.select %93, %94, %95 : vector<16x128xi1>, vector<16x128xf32>
    %97 = arith.addf %85, %96 : vector<16x128xf32>
    %cst_26 = arith.constant 0.000000e+00 : f32
    %98 = vector.shape_cast %91 : vector<1x128xf32> to vector<1x128xf32>
    %99 = vector.broadcast %98 : vector<1x128xf32> to vector<16x128xf32>
    %100 = vector.broadcast %cst_26 : f32 to vector<16x128xf32>
    %101 = arith.select %93, %99, %100 : vector<16x128xi1>, vector<16x128xf32>
    %102 = arith.addf %90, %101 : vector<16x128xf32>
    %103 = vector.extract_strided_slice %4 {offsets = [8, 0], sizes = [1, 128], strides = [1, 1]} : vector<16x128xf32> to vector<1x128xf32>
    %104 = vector.broadcast %103 : vector<1x128xf32> to vector<16x128xf32>
    %105 = arith.cmpf oge, %104, %4 : vector<16x128xf32>
    %cst_27 = arith.constant 1.000000e+00 : f32
    %cst_28 = arith.constant 0.000000e+00 : f32
    %106 = vector.broadcast %cst_27 : f32 to vector<16x128xf32>
    %107 = vector.broadcast %cst_28 : f32 to vector<16x128xf32>
    %108 = arith.select %105, %106, %107 : vector<16x128xi1>, vector<16x128xf32>
    %109 = arith.addf %97, %108 : vector<16x128xf32>
    %cst_29 = arith.constant 0.000000e+00 : f32
    %110 = vector.shape_cast %103 : vector<1x128xf32> to vector<1x128xf32>
    %111 = vector.broadcast %110 : vector<1x128xf32> to vector<16x128xf32>
    %112 = vector.broadcast %cst_29 : f32 to vector<16x128xf32>
    %113 = arith.select %105, %111, %112 : vector<16x128xi1>, vector<16x128xf32>
    %114 = arith.addf %102, %113 : vector<16x128xf32>
    %115 = vector.extract_strided_slice %4 {offsets = [9, 0], sizes = [1, 128], strides = [1, 1]} : vector<16x128xf32> to vector<1x128xf32>
    %116 = vector.broadcast %115 : vector<1x128xf32> to vector<16x128xf32>
    %117 = arith.cmpf oge, %116, %4 : vector<16x128xf32>
    %cst_30 = arith.constant 1.000000e+00 : f32
    %cst_31 = arith.constant 0.000000e+00 : f32
    %118 = vector.broadcast %cst_30 : f32 to vector<16x128xf32>
    %119 = vector.broadcast %cst_31 : f32 to vector<16x128xf32>
    %120 = arith.select %117, %118, %119 : vector<16x128xi1>, vector<16x128xf32>
    %121 = arith.addf %109, %120 : vector<16x128xf32>
    %cst_32 = arith.constant 0.000000e+00 : f32
    %122 = vector.shape_cast %115 : vector<1x128xf32> to vector<1x128xf32>
    %123 = vector.broadcast %122 : vector<1x128xf32> to vector<16x128xf32>
    %124 = vector.broadcast %cst_32 : f32 to vector<16x128xf32>
    %125 = arith.select %117, %123, %124 : vector<16x128xi1>, vector<16x128xf32>
    %126 = arith.addf %114, %125 : vector<16x128xf32>
    %127 = vector.extract_strided_slice %4 {offsets = [10, 0], sizes = [1, 128], strides = [1, 1]} : vector<16x128xf32> to vector<1x128xf32>
    %128 = vector.broadcast %127 : vector<1x128xf32> to vector<16x128xf32>
    %129 = arith.cmpf oge, %128, %4 : vector<16x128xf32>
    %cst_33 = arith.constant 1.000000e+00 : f32
    %cst_34 = arith.constant 0.000000e+00 : f32
    %130 = vector.broadcast %cst_33 : f32 to vector<16x128xf32>
    %131 = vector.broadcast %cst_34 : f32 to vector<16x128xf32>
    %132 = arith.select %129, %130, %131 : vector<16x128xi1>, vector<16x128xf32>
    %133 = arith.addf %121, %132 : vector<16x128xf32>
    %cst_35 = arith.constant 0.000000e+00 : f32
    %134 = vector.shape_cast %127 : vector<1x128xf32> to vector<1x128xf32>
    %135 = vector.broadcast %134 : vector<1x128xf32> to vector<16x128xf32>
    %136 = vector.broadcast %cst_35 : f32 to vector<16x128xf32>
    %137 = arith.select %129, %135, %136 : vector<16x128xi1>, vector<16x128xf32>
    %138 = arith.addf %126, %137 : vector<16x128xf32>
    %139 = vector.extract_strided_slice %4 {offsets = [11, 0], sizes = [1, 128], strides = [1, 1]} : vector<16x128xf32> to vector<1x128xf32>
    %140 = vector.broadcast %139 : vector<1x128xf32> to vector<16x128xf32>
    %141 = arith.cmpf oge, %140, %4 : vector<16x128xf32>
    %cst_36 = arith.constant 1.000000e+00 : f32
    %cst_37 = arith.constant 0.000000e+00 : f32
    %142 = vector.broadcast %cst_36 : f32 to vector<16x128xf32>
    %143 = vector.broadcast %cst_37 : f32 to vector<16x128xf32>
    %144 = arith.select %141, %142, %143 : vector<16x128xi1>, vector<16x128xf32>
    %145 = arith.addf %133, %144 : vector<16x128xf32>
    %cst_38 = arith.constant 0.000000e+00 : f32
    %146 = vector.shape_cast %139 : vector<1x128xf32> to vector<1x128xf32>
    %147 = vector.broadcast %146 : vector<1x128xf32> to vector<16x128xf32>
    %148 = vector.broadcast %cst_38 : f32 to vector<16x128xf32>
    %149 = arith.select %141, %147, %148 : vector<16x128xi1>, vector<16x128xf32>
    %150 = arith.addf %138, %149 : vector<16x128xf32>
    %151 = vector.extract_strided_slice %4 {offsets = [12, 0], sizes = [1, 128], strides = [1, 1]} : vector<16x128xf32> to vector<1x128xf32>
    %152 = vector.broadcast %151 : vector<1x128xf32> to vector<16x128xf32>
    %153 = arith.cmpf oge, %152, %4 : vector<16x128xf32>
    %cst_39 = arith.constant 1.000000e+00 : f32
    %cst_40 = arith.constant 0.000000e+00 : f32
    %154 = vector.broadcast %cst_39 : f32 to vector<16x128xf32>
    %155 = vector.broadcast %cst_40 : f32 to vector<16x128xf32>
    %156 = arith.select %153, %154, %155 : vector<16x128xi1>, vector<16x128xf32>
    %157 = arith.addf %145, %156 : vector<16x128xf32>
    %cst_41 = arith.constant 0.000000e+00 : f32
    %158 = vector.shape_cast %151 : vector<1x128xf32> to vector<1x128xf32>
    %159 = vector.broadcast %158 : vector<1x128xf32> to vector<16x128xf32>
    %160 = vector.broadcast %cst_41 : f32 to vector<16x128xf32>
    %161 = arith.select %153, %159, %160 : vector<16x128xi1>, vector<16x128xf32>
    %162 = arith.addf %150, %161 : vector<16x128xf32>
    %163 = vector.extract_strided_slice %4 {offsets = [13, 0], sizes = [1, 128], strides = [1, 1]} : vector<16x128xf32> to vector<1x128xf32>
    %164 = vector.broadcast %163 : vector<1x128xf32> to vector<16x128xf32>
    %165 = arith.cmpf oge, %164, %4 : vector<16x128xf32>
    %cst_42 = arith.constant 1.000000e+00 : f32
    %cst_43 = arith.constant 0.000000e+00 : f32
    %166 = vector.broadcast %cst_42 : f32 to vector<16x128xf32>
    %167 = vector.broadcast %cst_43 : f32 to vector<16x128xf32>
    %168 = arith.select %165, %166, %167 : vector<16x128xi1>, vector<16x128xf32>
    %169 = arith.addf %157, %168 : vector<16x128xf32>
    %cst_44 = arith.constant 0.000000e+00 : f32
    %170 = vector.shape_cast %163 : vector<1x128xf32> to vector<1x128xf32>
    %171 = vector.broadcast %170 : vector<1x128xf32> to vector<16x128xf32>
    %172 = vector.broadcast %cst_44 : f32 to vector<16x128xf32>
    %173 = arith.select %165, %171, %172 : vector<16x128xi1>, vector<16x128xf32>
    %174 = arith.addf %162, %173 : vector<16x128xf32>
    %175 = vector.extract_strided_slice %4 {offsets = [14, 0], sizes = [1, 128], strides = [1, 1]} : vector<16x128xf32> to vector<1x128xf32>
    %176 = vector.broadcast %175 : vector<1x128xf32> to vector<16x128xf32>
    %177 = arith.cmpf oge, %176, %4 : vector<16x128xf32>
    %cst_45 = arith.constant 1.000000e+00 : f32
    %cst_46 = arith.constant 0.000000e+00 : f32
    %178 = vector.broadcast %cst_45 : f32 to vector<16x128xf32>
    %179 = vector.broadcast %cst_46 : f32 to vector<16x128xf32>
    %180 = arith.select %177, %178, %179 : vector<16x128xi1>, vector<16x128xf32>
    %181 = arith.addf %169, %180 : vector<16x128xf32>
    %cst_47 = arith.constant 0.000000e+00 : f32
    %182 = vector.shape_cast %175 : vector<1x128xf32> to vector<1x128xf32>
    %183 = vector.broadcast %182 : vector<1x128xf32> to vector<16x128xf32>
    %184 = vector.broadcast %cst_47 : f32 to vector<16x128xf32>
    %185 = arith.select %177, %183, %184 : vector<16x128xi1>, vector<16x128xf32>
    %186 = arith.addf %174, %185 : vector<16x128xf32>
    %187 = vector.extract_strided_slice %4 {offsets = [15, 0], sizes = [1, 128], strides = [1, 1]} : vector<16x128xf32> to vector<1x128xf32>
    %188 = vector.broadcast %187 : vector<1x128xf32> to vector<16x128xf32>
    %189 = arith.cmpf oge, %188, %4 : vector<16x128xf32>
    %cst_48 = arith.constant 1.000000e+00 : f32
    %cst_49 = arith.constant 0.000000e+00 : f32
    %190 = vector.broadcast %cst_48 : f32 to vector<16x128xf32>
    %191 = vector.broadcast %cst_49 : f32 to vector<16x128xf32>
    %192 = arith.select %189, %190, %191 : vector<16x128xi1>, vector<16x128xf32>
    %193 = arith.addf %181, %192 : vector<16x128xf32>
    %cst_50 = arith.constant 0.000000e+00 : f32
    %194 = vector.shape_cast %187 : vector<1x128xf32> to vector<1x128xf32>
    %195 = vector.broadcast %194 : vector<1x128xf32> to vector<16x128xf32>
    %196 = vector.broadcast %cst_50 : f32 to vector<16x128xf32>
    %197 = arith.select %189, %195, %196 : vector<16x128xi1>, vector<16x128xf32>
    %198 = arith.addf %186, %197 : vector<16x128xf32>
    %199 = arith.mulf %193, %4 : vector<16x128xf32>
    %cst_51 = arith.constant 1.000000e+00 : f32
    %200 = vector.broadcast %cst_51 : f32 to vector<16x128xf32>
    %201 = arith.addf %200, %199 : vector<16x128xf32>
    %202 = arith.cmpf ogt, %201, %198 : vector<16x128xf32>
    %cst_52 = arith.constant 0.000000e+00 : f32
    %203 = vector.broadcast %cst_52 : f32 to vector<16x128xf32>
    %204 = arith.select %202, %193, %203 : vector<16x128xi1>, vector<16x128xf32>
    %cst_53 = arith.constant dense<0xFF800000> : vector<128xf32>
    %205 = vector.multi_reduction <maximumf>, %204, %cst_53 [0] : vector<16x128xf32> to vector<128xf32>
    %206 = vector.shape_cast %205 : vector<128xf32> to vector<1x128xf32>
    %cst_54 = arith.constant 1.000000e+00 : f32
    %207 = vector.broadcast %cst_54 : f32 to vector<1x128xf32>
    %208 = arith.maximumf %206, %207 : vector<1x128xf32>
    %209 = vector.broadcast %208 : vector<1x128xf32> to vector<16x128xf32>
    %210 = arith.cmpf ole, %193, %209 : vector<16x128xf32>
    %cst_55 = arith.constant 0.000000e+00 : f32
    %211 = vector.broadcast %cst_55 : f32 to vector<16x128xf32>
    %212 = arith.select %210, %4, %211 : vector<16x128xi1>, vector<16x128xf32>
    %cst_56 = arith.constant dense<0.000000e+00> : vector<128xf32>
    %213 = vector.multi_reduction <add>, %212, %cst_56 [0] : vector<16x128xf32> to vector<128xf32>
    %214 = vector.shape_cast %213 : vector<128xf32> to vector<1x128xf32>
    %cst_57 = arith.constant 1.000000e+00 : f32
    %215 = vector.broadcast %cst_57 : f32 to vector<1x128xf32>
    %216 = arith.subf %214, %215 : vector<1x128xf32>
    %217 = arith.divf %216, %208 : vector<1x128xf32>
    %218 = vector.broadcast %217 : vector<1x128xf32> to vector<16x128xf32>
    %219 = arith.subf %4, %218 : vector<16x128xf32>
    %cst_58 = arith.constant 0.000000e+00 : f32
    %220 = vector.broadcast %cst_58 : f32 to vector<16x128xf32>
    %221 = arith.maximumf %219, %220 : vector<16x128xf32>
    %c0_59 = arith.constant 0 : index
    %c0_60 = arith.constant 0 : index
    %222 = vector.load %arg2[%c0_59, %c0_60] : memref<16x128xf32, #tpu.memory_space<vmem>>, vector<16x128xf32>
    tpu.vector_store %arg2[%c0_59, %c0_60], %221 {strides = array<i32>} : memref<16x128xf32, #tpu.memory_space<vmem>>, vector<16x128xf32>,
    return
  }
  func.func @transform_0(%arg0: i32) -> (i32, i32) {
    %c0_i32 = arith.constant 0 : i32
    %c0_i32_0 = arith.constant 0 : i32
    return %c0_i32, %arg0 : i32, i32
  }
  func.func @transform_1(%arg0: i32) -> (i32, i32) {
    %c0_i32 = arith.constant 0 : i32
    %c0_i32_0 = arith.constant 0 : i32
    return %c0_i32, %arg0 : i32, i32
  }
}

</mosaic_0001>

<bundles_post_ra>
// kernel: tpu_custom_call.1
= control target key start
LH: loop header
LB: loop body
LE: loop exit
PB: predicated region body
PF: predicated region fallthrough
CT: control target
= control target key end

     0   :  { %6 = vsyncpa [#allocation3], 0  ;;  %s481_s0 = inlined_call_operand.hbm [shape: f32[16,128], index: 0, kind: input, shape index: {}]   ;;  %s482_s1 = inlined_call_operand.hbm [shape: f32[16,128], index: 1, kind: output, shape index: {}]  }
   0x1   :  { %7 = vsyncpa [#allocation4], 0  ;;  %s12_s8 = sshll.u32 %s481_s0, 4  ;;  %s340_s9 = smov [#allocation2]   ;;  %s13_s8 = int_to_ptr.hbm [resolvable:$true] %s12_s8 }
   0x2   :  { %s14_s10 = sshll.u32 %s340_s9, 4  ;;  %s341_s11 = smov 128   ;;  %s15_s10 = int_to_ptr.vmem [resolvable:$true] %s14_s10 }
   0x3   :  { %s342_s12 = smov 8  }
   0x4   :  { %20 = dma.hbm_to_vmem [thread:$0]  %s13_s8, 256, %s15_s10, [#allocation3], %s341_s11, %s341_s11, %s342_s12  }
   0x5   :  { %336 = dma.done.wait [#allocation3], 256  }
   0x6   :  { %337 = vsyncadd [#allocation3], 4294967040  ;;  %v25_v0 = vld [vmem:[#allocation2] sm:$0xff]  ;;  %v26_v1 = vld [vmem:[#allocation2 + $0x8] sm:$0xff]  ;;  %v343_v19 = vmov 0.0   ;;  %s344_s0 = smov [#allocation5]  }
   0x7   :  { %v27_v2 = vmax.f32 %v25_v0, %v26_v1  ;;  %s265_s13 = sshll.u32 %s344_s0, 4  ;;  %s267_s16 = sshll.u32 %s482_s1, 4  ;;  %s266_s13 = int_to_ptr.vmem [resolvable:$true] %s265_s13  ;;  %s268_s16 = int_to_ptr.hbm [resolvable:$true] %s267_s16 }
   0x9   :  { %v28_v3 = vrot.slane %v27_v2, 4 }
   0xb   :  { %v29_v4 = vmax.f32 %v27_v2, %v28_v3 }
   0xd   :  { %v30_v5 = vrot.slane %v29_v4, 2 }
   0xf   :  { %v31_v6 = vmax.f32 %v29_v4, %v30_v5 }
  0x11   :  { %v32_v7 = vrot.slane %v31_v6, 1 }
  0x13   :  { %v33_v8 = vmax.f32 %v31_v6, %v32_v7 }
  0x15   :  { %v361_v9 = vsub.f32 %v25_v0, %v33_v8  ;;  %v363_v10 = vsub.f32 %v26_v1, %v33_v8 }
  0x17   :  { %v36_v11 = vperm.slane %v361_v9, 0  ;;  %v47_v12 = vperm.slane %v361_v9, 1  ;;  %v58_v13 = vperm.slane %v361_v9, 2  ;;  %v69_v14 = vperm.slane %v361_v9, 3 }
  0x18   :  { %v80_v15 = vperm.slane %v361_v9, 4  ;;  %v91_v16 = vperm.slane %v361_v9, 5  ;;  %v372_v17 = vperm.slane %v361_v9, 6  ;;  %v375_v18 = vperm.slane %v361_v9, 7 }
  0x19   :  { %vm37_vm0 = vcmp.ge.f32.partialorder %v36_v11, %v361_v9  ;;  %vm38_vm1 = vcmp.ge.f32.partialorder %v36_v11, %v363_v10  ;;  %vm48_vm2 = vcmp.ge.f32.partialorder %v47_v12, %v361_v9  ;;  %vm49_vm3 = vcmp.ge.f32.partialorder %v47_v12, %v363_v10 }
  0x1a   :  { %v39_v20 = vsel %vm37_vm0, 1.0, %v343_v19  ;;  %v40_v21 = vsel %vm38_vm1, 1.0, %v343_v19  ;;  %v43_v22 = vsel %vm37_vm0, %v36_v11, 0.0  ;;  %v44_v23 = vsel %vm38_vm1, %v36_v11, 0.0 }
  0x1b   :  { %v50_v24 = vsel %vm48_vm2, 1.0, %v343_v19  ;;  %v51_v25 = vsel %vm49_vm3, 1.0, %v343_v19  ;;  %v54_v26 = vsel %vm48_vm2, %v47_v12, 0.0  ;;  %v55_v27 = vsel %vm49_vm3, %v47_v12, 0.0 }
  0x1c   :  { %v52_v28 = vadd.f32 %v50_v24, %v39_v20  ;;  %v53_v29 = vadd.f32 %v51_v25, %v40_v21  ;;  %v56_v30 = vadd.f32 %v54_v26, %v43_v22  ;;  %v57_v31 = vadd.f32 %v55_v27, %v44_v23 }
  0x1d   :  { %vm59_vm4 = vcmp.ge.f32.partialorder %v58_v13, %v361_v9  ;;  %vm60_vm5 = vcmp.ge.f32.partialorder %v58_v13, %v363_v10  ;;  %vm70_vm6 = vcmp.ge.f32.partialorder %v69_v14, %v361_v9  ;;  %vm71_vm7 = vcmp.ge.f32.partialorder %v69_v14, %v363_v10 }
  0x1e   :  { %v61_v32 = vsel %vm59_vm4, 1.0, %v343_v19  ;;  %v62_v33 = vsel %vm60_vm5, 1.0, %v343_v19  ;;  %v65_v34 = vsel %vm59_vm4, %v58_v13, 0.0  ;;  %v66_v35 = vsel %vm60_vm5, %v58_v13, 0.0 }
  0x1f   :  { %v63_v36 = vadd.f32 %v61_v32, %v52_v28  ;;  %v64_v37 = vadd.f32 %v62_v33, %v53_v29  ;;  %v67_v38 = vadd.f32 %v65_v34, %v56_v30  ;;  %v68_v39 = vadd.f32 %v66_v35, %v57_v31 }
  0x20   :  { %v72_v40 = vsel %vm70_vm6, 1.0, %v343_v19  ;;  %v73_v41 = vsel %vm71_vm7, 1.0, %v343_v19  ;;  %v76_v42 = vsel %vm70_vm6, %v69_v14, 0.0  ;;  %v77_v43 = vsel %vm71_vm7, %v69_v14, 0.0 }
  0x21   :  { %v74_v44 = vadd.f32 %v72_v40, %v63_v36  ;;  %v75_v45 = vadd.f32 %v73_v41, %v64_v37  ;;  %v78_v46 = vadd.f32 %v76_v42, %v67_v38  ;;  %v79_v47 = vadd.f32 %v77_v43, %v68_v39 }
  0x22   :  { %vm81_vm8 = vcmp.ge.f32.partialorder %v80_v15, %v361_v9  ;;  %vm82_vm9 = vcmp.ge.f32.partialorder %v80_v15, %v363_v10  ;;  %vm92_vm10 = vcmp.ge.f32.partialorder %v91_v16, %v361_v9  ;;  %vm93_vm11 = vcmp.ge.f32.partialorder %v91_v16, %v363_v10 }
  0x23   :  { %v83_v48 = vsel %vm81_vm8, 1.0, %v343_v19  ;;  %v84_v49 = vsel %vm82_vm9, 1.0, %v343_v19  ;;  %v87_v50 = vsel %vm81_vm8, %v80_v15, 0.0  ;;  %v88_v51 = vsel %vm82_vm9, %v80_v15, 0.0 }
  0x24   :  { %v85_v52 = vadd.f32 %v83_v48, %v74_v44  ;;  %v86_v53 = vadd.f32 %v84_v49, %v75_v45  ;;  %v89_v54 = vadd.f32 %v87_v50, %v78_v46  ;;  %v90_v55 = vadd.f32 %v88_v51, %v79_v47 }
  0x25   :  { %v94_v56 = vsel %vm92_vm10, 1.0, %v343_v19  ;;  %v95_v57 = vsel %vm93_vm11, 1.0, %v343_v19  ;;  %v98_v58 = vsel %vm92_vm10, %v91_v16, 0.0  ;;  %v99_v59 = vsel %vm93_vm11, %v91_v16, 0.0 }
  0x26   :  { %v96_v60 = vadd.f32 %v94_v56, %v85_v52  ;;  %v97_v61 = vadd.f32 %v95_v57, %v86_v53  ;;  %v100_v62 = vadd.f32 %v98_v58, %v89_v54  ;;  %v101_v63 = vadd.f32 %v99_v59, %v90_v55 }
  0x27   :  { %vm103_vm12 = vcmp.ge.f32.partialorder %v372_v17, %v361_v9  ;;  %vm104_vm13 = vcmp.ge.f32.partialorder %v372_v17, %v363_v10  ;;  %vm114_vm14 = vcmp.ge.f32.partialorder %v375_v18, %v361_v9  ;;  %vm115_vm15 = vcmp.ge.f32.partialorder %v375_v18, %v363_v10 }
  0x28   :  { %v105_v0 = vsel %vm103_vm12, 1.0, %v343_v19  ;;  %v106_v1 = vsel %vm104_vm13, 1.0, %v343_v19  ;;  %v109_v2 = vsel %vm103_vm12, %v372_v17, 0.0  ;;  %v110_v3 = vsel %vm104_vm13, %v372_v17, 0.0 }
  0x29   :  { %v107_v4 = vadd.f32 %v105_v0, %v96_v60  ;;  %v108_v5 = vadd.f32 %v106_v1, %v97_v61  ;;  %v111_v6 = vadd.f32 %v109_v2, %v100_v62  ;;  %v112_v7 = vadd.f32 %v110_v3, %v101_v63 }
  0x2a   :  { %v116_v8 = vsel %vm114_vm14, 1.0, %v343_v19  ;;  %v117_v11 = vsel %vm115_vm15, 1.0, %v343_v19  ;;  %v120_v12 = vsel %vm114_vm14, %v375_v18, 0.0  ;;  %v121_v13 = vsel %vm115_vm15, %v375_v18, 0.0 }
  0x2b   :  { %v118_v14 = vadd.f32 %v116_v8, %v107_v4  ;;  %v119_v15 = vadd.f32 %v117_v11, %v108_v5  ;;  %v122_v16 = vadd.f32 %v120_v12, %v111_v6  ;;  %v123_v20 = vadd.f32 %v121_v13, %v112_v7 }
  0x2c   :  { %v124_v21 = vperm.slane %v363_v10, 0  ;;  %v135_v17 = vperm.slane %v363_v10, 1  ;;  %v146_v22 = vperm.slane %v363_v10, 2  ;;  %v157_v23 = vperm.slane %v363_v10, 3 }
  0x2d   :  { %v168_v24 = vperm.slane %v363_v10, 4  ;;  %v179_v25 = vperm.slane %v363_v10, 5  ;;  %v424_v26 = vperm.slane %v363_v10, 6  ;;  %v427_v18 = vperm.slane %v363_v10, 7 }
  0x2e   :  { %vm125_vm0 = vcmp.ge.f32.partialorder %v124_v21, %v361_v9  ;;  %vm126_vm1 = vcmp.ge.f32.partialorder %v124_v21, %v363_v10  ;;  %vm136_vm2 = vcmp.ge.f32.partialorder %v135_v17, %v361_v9  ;;  %vm137_vm3 = vcmp.ge.f32.partialorder %v135_v17, %v363_v10 }
  0x2f   :  { %v127_v27 = vsel %vm125_vm0, 1.0, %v343_v19  ;;  %v128_v28 = vsel %vm126_vm1, 1.0, %v343_v19  ;;  %v131_v29 = vsel %vm125_vm0, %v124_v21, 0.0  ;;  %v132_v30 = vsel %vm126_vm1, %v124_v21, 0.0 }
  0x30   :  { %v129_v31 = vadd.f32 %v127_v27, %v118_v14  ;;  %v130_v32 = vadd.f32 %v128_v28, %v119_v15  ;;  %v133_v33 = vadd.f32 %v131_v29, %v122_v16  ;;  %v134_v34 = vadd.f32 %v132_v30, %v123_v20 }
  0x31   :  { %v138_v35 = vsel %vm136_vm2, 1.0, %v343_v19  ;;  %v139_v36 = vsel %vm137_vm3, 1.0, %v343_v19  ;;  %v142_v37 = vsel %vm136_vm2, %v135_v17, 0.0  ;;  %v143_v38 = vsel %vm137_vm3, %v135_v17, 0.0 }
  0x32   :  { %v140_v39 = vadd.f32 %v138_v35, %v129_v31  ;;  %v141_v40 = vadd.f32 %v139_v36, %v130_v32  ;;  %v144_v41 = vadd.f32 %v142_v37, %v133_v33  ;;  %v145_v42 = vadd.f32 %v143_v38, %v134_v34 }
  0x33   :  { %vm147_vm4 = vcmp.ge.f32.partialorder %v146_v22, %v361_v9  ;;  %vm148_vm5 = vcmp.ge.f32.partialorder %v146_v22, %v363_v10  ;;  %vm158_vm6 = vcmp.ge.f32.partialorder %v157_v23, %v361_v9  ;;  %vm159_vm7 = vcmp.ge.f32.partialorder %v157_v23, %v363_v10 }
  0x34   :  { %v149_v43 = vsel %vm147_vm4, 1.0, %v343_v19  ;;  %v150_v44 = vsel %vm148_vm5, 1.0, %v343_v19  ;;  %v153_v45 = vsel %vm147_vm4, %v146_v22, 0.0  ;;  %v154_v46 = vsel %vm148_vm5, %v146_v22, 0.0 }
  0x35   :  { %v151_v47 = vadd.f32 %v149_v43, %v140_v39  ;;  %v152_v48 = vadd.f32 %v150_v44, %v141_v40  ;;  %v155_v49 = vadd.f32 %v153_v45, %v144_v41  ;;  %v156_v50 = vadd.f32 %v154_v46, %v145_v42 }
  0x36   :  { %v160_v51 = vsel %vm158_vm6, 1.0, %v343_v19  ;;  %v161_v52 = vsel %vm159_vm7, 1.0, %v343_v19  ;;  %v164_v53 = vsel %vm158_vm6, %v157_v23, 0.0  ;;  %v165_v54 = vsel %vm159_vm7, %v157_v23, 0.0 }
  0x37   :  { %v162_v55 = vadd.f32 %v160_v51, %v151_v47  ;;  %v163_v56 = vadd.f32 %v161_v52, %v152_v48  ;;  %v166_v57 = vadd.f32 %v164_v53, %v155_v49  ;;  %v167_v58 = vadd.f32 %v165_v54, %v156_v50 }
  0x38   :  { %vm169_vm8 = vcmp.ge.f32.partialorder %v168_v24, %v361_v9  ;;  %vm170_vm9 = vcmp.ge.f32.partialorder %v168_v24, %v363_v10  ;;  %vm180_vm10 = vcmp.ge.f32.partialorder %v179_v25, %v361_v9  ;;  %vm181_vm11 = vcmp.ge.f32.partialorder %v179_v25, %v363_v10 }
  0x39   :  { %v171_v59 = vsel %vm169_vm8, 1.0, %v343_v19  ;;  %v172_v60 = vsel %vm170_vm9, 1.0, %v343_v19  ;;  %v175_v61 = vsel %vm169_vm8, %v168_v24, 0.0  ;;  %v176_v62 = vsel %vm170_vm9, %v168_v24, 0.0 }
  0x3a   :  { %v173_v63 = vadd.f32 %v171_v59, %v162_v55  ;;  %v174_v0 = vadd.f32 %v172_v60, %v163_v56  ;;  %v177_v1 = vadd.f32 %v175_v61, %v166_v57  ;;  %v178_v2 = vadd.f32 %v176_v62, %v167_v58 }
  0x3b   :  { %v182_v3 = vsel %vm180_vm10, 1.0, %v343_v19  ;;  %v183_v4 = vsel %vm181_vm11, 1.0, %v343_v19  ;;  %v186_v5 = vsel %vm180_vm10, %v179_v25, 0.0  ;;  %v187_v6 = vsel %vm181_vm11, %v179_v25, 0.0 }
  0x3c   :  { %v184_v7 = vadd.f32 %v182_v3, %v173_v63  ;;  %v185_v8 = vadd.f32 %v183_v4, %v174_v0  ;;  %v188_v11 = vadd.f32 %v186_v5, %v177_v1  ;;  %v189_v12 = vadd.f32 %v187_v6, %v178_v2 }
  0x3d   :  { %vm191_vm12 = vcmp.ge.f32.partialorder %v424_v26, %v361_v9  ;;  %vm192_vm13 = vcmp.ge.f32.partialorder %v424_v26, %v363_v10  ;;  %vm202_vm14 = vcmp.ge.f32.partialorder %v427_v18, %v361_v9  ;;  %vm203_vm15 = vcmp.ge.f32.partialorder %v427_v18, %v363_v10 }
  0x3e   :  { %v193_v13 = vsel %vm191_vm12, 1.0, %v343_v19  ;;  %v194_v14 = vsel %vm192_vm13, 1.0, %v343_v19  ;;  %v197_v15 = vsel %vm191_vm12, %v424_v26, 0.0  ;;  %v198_v16 = vsel %vm192_vm13, %v424_v26, 0.0 }
  0x3f   :  { %v195_v20 = vadd.f32 %v193_v13, %v184_v7  ;;  %v196_v21 = vadd.f32 %v194_v14, %v185_v8  ;;  %v199_v17 = vadd.f32 %v197_v15, %v188_v11  ;;  %v200_v22 = vadd.f32 %v198_v16, %v189_v12 }
  0x40   :  { %v204_v23 = vsel %vm202_vm14, 1.0, %v343_v19  ;;  %v205_v24 = vsel %vm203_vm15, 1.0, %v343_v19  ;;  %v208_v25 = vsel %vm202_vm14, %v427_v18, 0.0  ;;  %v209_v27 = vsel %vm203_vm15, %v427_v18, 0.0 }
  0x41   :  { %v206_v28 = vadd.f32 %v204_v23, %v195_v20  ;;  %v207_v29 = vadd.f32 %v205_v24, %v196_v21  ;;  %v210_v30 = vadd.f32 %v208_v25, %v199_v17  ;;  %v211_v31 = vadd.f32 %v209_v27, %v200_v22 }
  0x43   :  { %v212_v32 = vmul.f32 %v206_v28, %v361_v9  ;;  %v213_v26 = vmul.f32 %v207_v29, %v363_v10 }
  0x45   :  { %v214_v33 = vadd.f32 1.0, %v212_v32  ;;  %v215_v34 = vadd.f32 1.0, %v213_v26 }
  0x47   :  { %vm216_vm0 = vcmp.gt.f32.partialorder %v214_v33, %v210_v30  ;;  %vm217_vm1 = vcmp.gt.f32.partialorder %v215_v34, %v211_v31 }
  0x48   :  { %v218_v35 = vsel %vm216_vm0, %v206_v28, 0.0  ;;  %v219_v36 = vsel %vm217_vm1, %v207_v29, 0.0 }
  0x49   :  { %v220_v37 = vmax.f32 %v218_v35, %v219_v36 }
  0x4b   :  { %v221_v19 = vrot.slane %v220_v37, 4 }
  0x4d   :  { %v222_v38 = vmax.f32 %v220_v37, %v221_v19 }
  0x4f   :  { %v223_v39 = vrot.slane %v222_v38, 2 }
  0x51   :  { %v224_v40 = vmax.f32 %v222_v38, %v223_v39 }
  0x53   :  { %v225_v18 = vrot.slane %v224_v40, 1 }
  0x55   :  { %v226_v41 = vmax.f32 %v224_v40, %v225_v18 }
  0x57   :  { %v227_v42 = vmax.f32 %v226_v41, 1.0 }
  0x59   :  { %vm228_vm2 = vcmp.le.f32.partialorder %v206_v28, %v227_v42  ;;  %vm229_vm3 = vcmp.le.f32.partialorder %v207_v29, %v227_v42  ;;  %286 = vrcp.f32 %v227_v42  ;;  %v251_v51 = vand.u32 2147483648, %v227_v42 }
  0x5a   :  { %v230_v43 = vsel %vm228_vm2, %v361_v9, 0.0  ;;  %v231_v44 = vsel %vm229_vm3, %v363_v10, 0.0  ;;  %vm245_vm4 = vweird.f32 %v227_v42  ;;  %v249_v53 = vand.u32 2147483647, %v227_v42 }
  0x5b   :  { %v232_v45 = vadd.f32 %v231_v44, %v230_v43  ;;  %v252_v57 = vor.u32 1.1754944e-38, %v251_v51 }
  0x5c   :  { %vm250_vm7 = vcmp.eq.f32.partialorder %v249_v53, 8.507059e+37 }
  0x5d   :  { %v233_v46 = vrot.slane %v232_v45, 4 }
  0x5f   :  { %v287_v47 = vpop.eup %286  ;;  %v234_v48 = vadd.f32 %v233_v46, %v232_v45 }
  0x60   :  { %v241_v49 = vmul.f32 %v287_v47, %v227_v42  ;;  %vm246_vm5 = vweird.f32 %v287_v47 }
  0x61   :  { %v235_v50 = vrot.slane %v234_v48, 2  ;;  %vm247_vm6 = vmor %vm245_vm4, %vm246_vm5 }
  0x62   :  { %v242_v52 = vsub.f32 1.0, %v241_v49 }
  0x63   :  { %v236_v54 = vadd.f32 %v235_v50, %v234_v48 }
  0x64   :  { %v243_v55 = vmul.f32 %v287_v47, %v242_v52 }
  0x65   :  { %v237_v56 = vrot.slane %v236_v54, 1 }
  0x66   :  { %v244_v58 = vadd.f32 %v287_v47, %v243_v55 }
  0x67   :  { %v238_v59 = vadd.f32 %v237_v56, %v236_v54 }
  0x68   :  { %v248_v60 = vsel %vm247_vm6, %v287_v47, %v244_v58 }
  0x69   :  { %v280_v61 = vadd.f32 -1.0, %v238_v59  ;;  %v253_v62 = vsel %vm250_vm7, %v252_v57, %v248_v60 }
  0x6b   :  { %v254_v63 = vmul.f32 %v280_v61, %v253_v62 }
  0x6d   :  { %v255_v0 = vsub.f32 %v361_v9, %v254_v63  ;;  %v256_v1 = vsub.f32 %v363_v10, %v254_v63 }
  0x6f   :  { %v257_v2 = vmax.f32 %v255_v0, 0.0  ;;  %v258_v3 = vmax.f32 %v256_v1, 0.0 }
  0x71   :  { %259 = vst [vmem:[#allocation5] sm:$0xff] %v257_v2 }
  0x72   :  { %260 = vst [vmem:[#allocation5 + $0x8] sm:$0xff] %v258_v3 }
  0x73   :  { %273 = dma.vmem_to_hbm [thread:$0]  %s266_s13, 256, %s268_s16, [#allocation4], %s341_s11, %s341_s11, %s342_s12  }
  0x74   :  { %338 = dma.done.wait [#allocation4], 256  }
  0x75   :  { %339 = vsyncadd [#allocation4], 4294967040 }
  0x76   :  { %278 = vsyncpa [#allocation3], 1 }
  0x77   :  { %279 = vsyncpa [#allocation4], 1 }

</bundles_post_ra>
